<compile_context>
chip_gen: v7x
topology: tpu7x:2x2x1
jax: 0.10.0
libtpu: 0.0.40
codegen_flags: <defaults>
</compile_context>

<pallas_src>
import functools

import jax
import jax.numpy as jnp
from jax.experimental import pallas as pl
from jax.experimental.pallas import tpu as pltpu


def _cdiv(a: int, b: int) -> int:
    return -(-a // b)


def _round_up(a: int, m: int) -> int:
    return _cdiv(a, m) * m


def _heatmap_kernel(params_ref, out_ref, *, w: int, row_tile: int,
                    resident: bool, inv_two_sigma_sq: float):
    """One grid step computes a (row_tile, H*W) slab of flattened heatmaps.

    params_ref: VMEM (padded, 4) if resident (sliced by program_id) else
                (row_tile, 4).  Columns: [lx, ly, inv_norm, 0].
    out_ref   : VMEM (row_tile, H*W) lane-dense flattened heatmaps.
    """
    hw = out_ref.shape[1]

    # Flat pixel coordinates, built once per block from a single iota.
    # col -> (y, x): y = floor((col+0.5)/W), x = col - y*W.  Exact for the
    # default W=16 (power of two); for non-power-of-two W it relies on a
    # >= 0.5/W margin from integer boundaries (safe for small W).
    col = jax.lax.broadcasted_iota(jnp.int32, (1, hw), 1).astype(jnp.float32)
    yf = jnp.floor((col + 0.5) * (1.0 / w))
    xf = col - yf * w

    if resident:
        # Parameter slab is DMA'd once and stays resident; pick this step's rows.
        row_start = pl.multiple_of(pl.program_id(0) * row_tile, 8)
        lx = params_ref[pl.ds(row_start, row_tile), 0:1]    # (row_tile, 1)
        ly = params_ref[pl.ds(row_start, row_tile), 1:2]
        inv = params_ref[pl.ds(row_start, row_tile), 2:3]
    else:
        lx = params_ref[:, 0:1]
        ly = params_ref[:, 1:2]
        inv = params_ref[:, 2:3]

    dx = xf - lx            # (row_tile, hw)
    dy = yf - ly
    # Kept as one fused exp over the lane-dense slab: avoids any minor-dim
    # merge/reshape and matches the reference rounding.  No per-row max
    # reduce: `inv` already encodes 1/(gmax + 1e-8) analytically, so the
    # normalization is a single fused broadcast multiply into the store.
    g = jnp.exp(-(dx * dx + dy * dy) * inv_two_sigma_sq)
    out_ref[...] = (g * inv).astype(out_ref.dtype)


def heatmap_generator(landmarks: jax.Array,
                      heatmap_size=(16, 16),
                      sigma: float = 2.0,
                      max_row_tile: int = 4096,
                      out_dtype=jnp.float32) -> jax.Array:
    """JAX/Pallas equivalent of HeatmapGenerator.forward.

    Args:
      landmarks: (B, N, 2) float array of landmark (x, y) coords in 768-space.
      out_dtype: heatmap dtype.  float32 matches the reference; bfloat16
        halves HBM writeback (v5e store-roofline lever) but loosens accuracy.
    Returns:
      (B, N, H, W) heatmaps, each normalized by its max (+1e-8).
    """
    b, n, _ = landmarks.shape
    h, w = heatmap_size
    hw = h * w
    rows = b * n
    c = 1.0 / (2.0 * float(sigma) ** 2)
    # Lane-dense unmasked stores need H*W to be a multiple of 128 (holds for
    # the default 16x16); other sizes still work, just with masked stores.

    # --- Per-row parameters (O(rows) glue, plain JAX) -----------------------
    lm = landmarks.astype(jnp.float32).reshape(rows, 2)
    lx = lm[:, 0] * (w / 768.0)
    ly = lm[:, 1] * (h / 768.0)

    # Analytic per-row max: the grid pixel nearest the landmark maximizes the
    # Gaussian (squared distance is separable & convex, exp is monotone), so
    # evaluating the SAME expression order as the kernel at that pixel equals
    # the array max to within exp-implementation ulps (<< the 1e-5 tolerance).
    nx = jnp.clip(jnp.round(lx), 0.0, float(w - 1))
    ny = jnp.clip(jnp.round(ly), 0.0, float(h - 1))
    dxn = nx - lx
    dyn = ny - ly
    gmax = jnp.exp(-(dxn * dxn + dyn * dyn) * c)
    inv = 1.0 / (gmax + 1e-8)

    params = jnp.stack(
        [lx, ly, inv, jnp.zeros_like(inv)], axis=-1)        # (rows, 4)

    # --- Row tiling ---------------------------------------------------------
    # steps = cdiv(rows, max_row_tile); for rows >= 1024 force an even number
    # of steps so v7x megacore can split the "parallel" axis across both TCs.
    steps = _cdiv(rows, max_row_tile)
    if rows >= 1024:
        steps = max(steps, 2)
        if steps % 2:
            steps += 1
    row_tile = _round_up(_cdiv(rows, steps), 8)
    padded = steps * row_tile
    if padded != rows:
        params = jnp.pad(params, ((0, padded - rows), (0, 0)))

    # Resident parameter slab occupies padded*512 B of VMEM (lane padding of
    # the 4-wide row); keep it resident while that is small, otherwise fall
    # back to per-step (row_tile, 4) blocks.
    resident = padded * 512 <= (4 << 20)
    if resident:
        param_spec = pl.BlockSpec((padded, 4), lambda i: (0, 0))
    else:
        param_spec = pl.BlockSpec((row_tile, 4), lambda i: (i, 0))

    kernel = functools.partial(
        _heatmap_kernel,
        w=w,
        row_tile=row_tile,
        resident=resident,
        inv_two_sigma_sq=c,
    )

    cost = pl.CostEstimate(
        flops=8 * padded * hw,
        transcendentals=padded * hw,
        bytes_accessed=padded * hw * jnp.dtype(out_dtype).itemsize + padded * 16,
    )

    out = pl.pallas_call(
        kernel,
        out_shape=jax.ShapeDtypeStruct((padded, hw), out_dtype),
        grid_spec=pltpu.PrefetchScalarGridSpec(
            num_scalar_prefetch=0,
            grid=(steps,),
            in_specs=[param_spec],
            out_specs=pl.BlockSpec((row_tile, hw), lambda i: (i, 0)),
        ),
        compiler_params=pltpu.CompilerParams(
            dimension_semantics=("parallel",),
            vmem_limit_bytes=32 * 1024 * 1024,
        ),
        cost_estimate=cost,
    )(params)

    return out[:rows].reshape(b, n, h, w)


def _reference(landmarks, heatmap_size=(16, 16), sigma=2.0):
    """Pure-JAX reference matching the PyTorch module exactly."""
    b, n, _ = landmarks.shape
    h, w = heatmap_size
    scale = jnp.array([w / 768.0, h / 768.0], dtype=jnp.float32)
    scaled = landmarks.astype(jnp.float32) * scale
    y_grid, x_grid = jnp.meshgrid(
        jnp.arange(h, dtype=jnp.float32),
        jnp.arange(w, dtype=jnp.float32),
        indexing="ij",
    )
    lx = scaled[:, :, 0][:, :, None, None]
    ly = scaled[:, :, 1][:, :, None, None]
    g = jnp.exp(-((x_grid[None, None] - lx) ** 2 +
                  (y_grid[None, None] - ly) ** 2) / (2.0 * sigma ** 2))
    gmax = jnp.max(g.reshape(b, n, -1), axis=2, keepdims=True)[:, :, :, None]
    return g / (gmax + 1e-8)


if __name__ == "__main__":
    key = jax.random.PRNGKey(0)
    heatmap_size = (16, 16)
    sigma = 2.0
    k1, k2, k3 = jax.random.split(key, 3)

    # Case 1: canonical small shape (B=2, N=4).
    lm1 = jax.random.uniform(k1, (2, 4, 2), dtype=jnp.float32,
                             minval=0.0, maxval=768.0)
    out1 = jax.block_until_ready(
        heatmap_generator(lm1, heatmap_size=heatmap_size, sigma=sigma))
    ref1 = _reference(lm1, heatmap_size=heatmap_size, sigma=sigma)
    assert out1.shape == (2, 4, *heatmap_size)
    assert jnp.allclose(out1, ref1, atol=1e-5, rtol=1e-5)

    # Case 2: non-multiple-of-8 row count (B=5, N=3) -> exercises row padding.
    lm2 = jax.random.uniform(k2, (5, 3, 2), dtype=jnp.float32,
                             minval=0.0, maxval=768.0)
    out2 = jax.block_until_ready(
        heatmap_generator(lm2, heatmap_size=heatmap_size, sigma=sigma))
    ref2 = _reference(lm2, heatmap_size=heatmap_size, sigma=sigma)
    assert out2.shape == (5, 3, *heatmap_size)
    assert jnp.allclose(out2, ref2, atol=1e-5, rtol=1e-5)

    # Case 3: rows >= 1024 -> exercises the 2-step parallel grid with the
    # resident parameter slab sliced by program_id.
    lm3 = jax.random.uniform(k3, (8, 150, 2), dtype=jnp.float32,
                             minval=0.0, maxval=768.0)
    out3 = jax.block_until_ready(
        heatmap_generator(lm3, heatmap_size=heatmap_size, sigma=sigma))
    ref3 = _reference(lm3, heatmap_size=heatmap_size, sigma=sigma)
    assert out3.shape == (8, 150, *heatmap_size)
    assert jnp.allclose(out3, ref3, atol=1e-5, rtol=1e-5)

    print("KERNEL_OK")
</pallas_src>

<mosaic_0001>
module attributes {stable_mosaic.version = 11 : i64} {
  func.func @_heatmap_kernel(%arg0: i32, %arg1: memref<8x4xf32, #tpu.memory_space<vmem>>, %arg2: memref<8x256xf32, #tpu.memory_space<vmem>>) attributes {dimension_semantics = [#tpu.dimension_semantics<parallel>], iteration_bounds = array<i64: 1>, scalar_prefetch = 0 : i64, scratch_operands = 0 : i64, tpu.core_type = #tpu.core_type<tc>, window_params = [{pipeline_mode = #tpu.pipeline_mode<synchronous>, transform_indices = @transform_0, window_bounds = array<i64: 8, 4>}, {transform_indices = @transform_1, window_bounds = array<i64: 8, 256>}]} {
    %0 = tpu.iota {dimensions = array<i32: 1>} : vector<1x256xi32>
    %1 = arith.sitofp %0 : vector<1x256xi32> to vector<1x256xf32>
    %cst = arith.constant 5.000000e-01 : f32
    %2 = vector.broadcast %cst : f32 to vector<1x256xf32>
    %3 = arith.addf %1, %2 : vector<1x256xf32>
    %cst_0 = arith.constant 6.250000e-02 : f32
    %4 = vector.broadcast %cst_0 : f32 to vector<1x256xf32>
    %5 = arith.mulf %3, %4 : vector<1x256xf32>
    %6 = math.floor %5 : vector<1x256xf32>
    %cst_1 = arith.constant 1.600000e+01 : f32
    %7 = vector.broadcast %cst_1 : f32 to vector<1x256xf32>
    %8 = arith.mulf %6, %7 : vector<1x256xf32>
    %9 = arith.subf %1, %8 : vector<1x256xf32>
    %c8_i32 = arith.constant 8 : i32
    %10 = arith.muli %arg0, %c8_i32 : i32
    %11 = tpu.assume_multiple %10, 8 : i32
    %12 = arith.index_cast %11 : i32 to index
    %c0 = arith.constant 0 : index
    %13 = vector.load %arg1[%12, %c0] : memref<8x4xf32, #tpu.memory_space<vmem>>, vector<8x1xf32>
    %14 = arith.index_cast %11 : i32 to index
    %c1 = arith.constant 1 : index
    %15 = vector.load %arg1[%14, %c1] : memref<8x4xf32, #tpu.memory_space<vmem>>, vector<8x1xf32>
    %16 = arith.index_cast %11 : i32 to index
    %c2 = arith.constant 2 : index
    %17 = vector.load %arg1[%16, %c2] : memref<8x4xf32, #tpu.memory_space<vmem>>, vector<8x1xf32>
    %18 = vector.broadcast %9 : vector<1x256xf32> to vector<8x256xf32>
    %19 = vector.broadcast %13 : vector<8x1xf32> to vector<8x256xf32>
    %20 = arith.subf %18, %19 : vector<8x256xf32>
    %21 = vector.broadcast %6 : vector<1x256xf32> to vector<8x256xf32>
    %22 = vector.broadcast %15 : vector<8x1xf32> to vector<8x256xf32>
    %23 = arith.subf %21, %22 : vector<8x256xf32>
    %24 = arith.mulf %20, %20 : vector<8x256xf32>
    %25 = arith.mulf %23, %23 : vector<8x256xf32>
    %26 = arith.addf %24, %25 : vector<8x256xf32>
    %cst_2 = arith.constant 0.000000e+00 : f32
    %27 = vector.broadcast %cst_2 : f32 to vector<8x256xf32>
    %28 = arith.subf %27, %26 : vector<8x256xf32>
    %cst_3 = arith.constant 1.250000e-01 : f32
    %29 = vector.broadcast %cst_3 : f32 to vector<8x256xf32>
    %30 = arith.mulf %28, %29 : vector<8x256xf32>
    %31 = math.exp %30 : vector<8x256xf32>
    %32 = vector.broadcast %17 : vector<8x1xf32> to vector<8x256xf32>
    %33 = arith.mulf %31, %32 : vector<8x256xf32>
    %c0_4 = arith.constant 0 : index
    %c0_5 = arith.constant 0 : index
    %34 = vector.load %arg2[%c0_4, %c0_5] : memref<8x256xf32, #tpu.memory_space<vmem>>, vector<8x256xf32>
    tpu.vector_store %arg2[%c0_4, %c0_5], %33 {strides = array<i32>} : memref<8x256xf32, #tpu.memory_space<vmem>>, vector<8x256xf32>,
    return
  }
  func.func @transform_0(%arg0: i32) -> (i32, i32) {
    %c0_i32 = arith.constant 0 : i32
    %c0_i32_0 = arith.constant 0 : i32
    %c0_i32_1 = arith.constant 0 : i32
    return %c0_i32, %c0_i32_0 : i32, i32
  }
  func.func @transform_1(%arg0: i32) -> (i32, i32) {
    %c0_i32 = arith.constant 0 : i32
    %c0_i32_0 = arith.constant 0 : i32
    return %arg0, %c0_i32 : i32, i32
  }
}

</mosaic_0001>

<bundles_post_ra>
// kernel: tpu_custom_call.1
= control target key start
LH: loop header
LB: loop body
LE: loop exit
PB: predicated region body
PF: predicated region fallthrough
CT: control target
= control target key end

     0   :  { %s141_s0 = inlined_call_operand.vmem [shape: f32[8,4], index: 0, kind: input, shape index: {}]   ;;  %s142_s1 = inlined_call_operand.hbm [shape: f32[8,256], index: 1, kind: output, shape index: {}]  }
   0x1   :  { %v26_v0 = vld [vmem:[%s141_s0] sm:$0xff] }
   0x2   :  { %6 = vsyncpa [#allocation3], 0  ;;  %v112_v1 = vmov 0   ;;  %v113_v2 = vmov 2   ;;  %v114_v3 = vmov 1   ;;  %v9_v4 = vlaneseq  ;;  %s115_s0 = smov [#allocation2]  }
   0x3   :  { %80 = vset.pattern.permute.xlu0 %v112_v1  ;;  %82 = vset.pattern.permute.xlu1 %v113_v2  ;;  %s68_s8 = sshll.u32 %s115_s0, 4  ;;  %s69_s8 = int_to_ptr.vmem [resolvable:$true] %s68_s8 }
   0x4   :  { %29 = vperm.xlu0 %80, %v26_v0   ;;  %55 = vperm.xlu1 %82, %v26_v0   ;;  %v10_v5 = vand.u32 127, %v9_v4  ;;  %s88_s9 = scalar_lea.vmem %s69_s8, 256  ;;  %p93_p1 = scmp.lt.s32.totalorder %s69_s8, %s69_s8 }
   0x5   :  { %p89_p0 = scmp.ne.s32.totalorder %s69_s8, %s88_s9  ;;  %p94_p2 = scmp.lt.s32.totalorder %s88_s9, %s88_s9 }
   0x6   :  { %v11_v6 = vadd.s32 128, %v10_v5  ;;  %v12_v7 = vcvt.s32.f32 %v10_v5 }
   0x7   :  { %p95_p3 = por %p94_p2, %p93_p1 }
   0x8   :  { %81 = vset.pattern.permute.xlu0 %v114_v3  ;;  %v13_v8 = vcvt.s32.f32 %v11_v6  ;;  %v14_v9 = vadd.f32 0.5, %v12_v7 }
   0x9   :  { %35 = vperm.xlu0 %81, %v26_v0   ;;  %p96_p4 = pnand %p95_p3, %p89_p0 }
   0xa   :  { %v15_v10 = vadd.f32 0.5, %v13_v8  ;;  %v16_v11 = vmul.f32 0.0625, %v14_v9 }
   0xc   :  { %v17_v12 = vmul.f32 0.0625, %v15_v10  ;;  %v18_v13 = vfloor.f32 %v16_v11 }
   0xd   :  { %83 = vset.pattern.permute.xlu0 %v113_v2 }
   0xe   :  { %v19_v14 = vfloor.f32 %v17_v12  ;;  %v20_v15 = vmul.f32 16.0, %v18_v13 }
  0x10   :  { %v21_v16 = vmul.f32 16.0, %v19_v14  ;;  %v22_v18 = vsub.f32 %v12_v7, %v20_v15 }
  0x12   :  { %v23_v19 = vsub.f32 %v13_v8, %v21_v16 }
  0x83   :  { %v30_v17 = vpop.permute.xlu0 %29  ;;  %v56_v37 = vpop.permute.xlu1 %55 }
  0x84   :  { %v32_v20 = vsub.f32 %v22_v18, %v30_v17  ;;  %v33_v21 = vsub.f32 %v23_v19, %v30_v17 }
  0x86   :  { %v40_v25 = vmul.f32 %v32_v20, %v32_v20  ;;  %v41_v26 = vmul.f32 %v33_v21, %v33_v21 }
  0x88   :  { %v36_v22 = vpop.permute.xlu0 %35 }
  0x89   :  { %v38_v23 = vsub.f32 %v18_v13, %v36_v22  ;;  %v39_v24 = vsub.f32 %v19_v14, %v36_v22 }
  0x8b   :  { %v42_v27 = vmul.f32 %v38_v23, %v38_v23  ;;  %v43_v28 = vmul.f32 %v39_v24, %v39_v24 }
  0x8d   :  { %v44_v29 = vadd.f32 %v42_v27, %v40_v25  ;;  %v45_v30 = vadd.f32 %v43_v28, %v41_v26 }
  0x8f   :  { %v46_v31 = vsub.f32 0.0, %v44_v29  ;;  %v47_v32 = vsub.f32 0.0, %v45_v30 }
  0x91   :  { %v48_v33 = vmul.f32 0.125, %v46_v31  ;;  %v49_v34 = vmul.f32 0.125, %v47_v32 }
  0x93   :  { %v50_v35 = vmul.f32 1.442695, %v48_v33  ;;  %v52_v36 = vmul.f32 1.442695, %v49_v34 }
  0x95   :  { %84 = vpow2.f32 %v50_v35 }
  0x96   :  { %86 = vpow2.f32 %v52_v36 }
  0x9f   :  { %v85_v38 = vpop.eup %84 }
  0xa0   :  { %v87_v39 = vpop.eup %86  ;;  %v58_v40 = vmul.f32 %v85_v38, %v56_v37 }
  0xa1   :  { %v59_v41 = vmul.f32 %v87_v39, %v56_v37 }
  0xa2   :  { %60 = vst [vmem:[#allocation2] sm:$0xff] %v58_v40 }
  0xa3   :  { %61 = vst [vmem:[#allocation2 + $0x8] sm:$0xff] %v59_v41 }
  0xa4   :  { %99 = shalt.err (!%p96_p4)
}
  0xa5   :  { %s100_s12 = scalar_lea.hbm %s142_s1, 256 }
  0xa6   :  { %p101_p5 = scmp.ne.s32.totalorder %s142_s1, %s100_s12  ;;  %p104_p6 = scmp.lt.u32.totalorder %s100_s12, %s142_s1 }
  0xa8   :  { %p106_p7 = pnand %p104_p6, %p101_p5 }
  0xaa   :  { %109 = shalt.err (!%p106_p7)
}
  0xab   :  { %71 = dma.vmem_to_hbm [thread:$0]  %s69_s8, 256, %s142_s1, [#allocation3]  }
  0xac   :  { %110 = dma.done.wait [#allocation3], 256  }
  0xad   :  { %111 = vsyncadd [#allocation3], 4294967040 }
  0xae   :  { %75 = vsyncpa [#allocation3], 1 }

</bundles_post_ra>
